<compile_context>
chip_gen: v7x
topology: tpu7x:2x2x1
jax: 0.10.0
libtpu: 0.0.40
codegen_flags: <defaults>
</compile_context>

<pallas_src>
import functools
import math

import jax
import jax.numpy as jnp
from jax import lax
from jax.experimental import pallas as pl
from jax.experimental.pallas import tpu as pltpu


_VMEM_BUDGET = 40 << 20          # target working-set (fits v7x 64 MiB physical)


# ----------------------------- tiling helpers -------------------------------


def _divisor_tile(n, cap, align):
    """Largest divisor of n that is <= cap and a multiple of align, else n (full)."""
    for t in range(min(cap, n), 0, -1):
        if n % t == 0 and t % align == 0:
            return t
    return n


def _head_group_size(h, d_k):
    """Heads per attention program.

    Largest divisor G of h whose lane width G*d_k is a multiple of 128 and
    <= 512 (lane-dense, unmasked HBM loads/stores).  Fall back to all heads
    (block width == d_out, a legal full-extent block)."""
    best = h
    for g in range(1, h + 1):
        if h % g != 0:
            continue
        w = g * d_k
        if w % 128 == 0 and w <= 512:
            best = g
    return best


def _vmem_limit(est_bytes):
    """Scoped-VMEM override: only raise it when the estimate needs it."""
    if est_bytes <= (24 << 20):
        return None
    return min(est_bytes + (8 << 20), 48 << 20)


def _attn_vmem_bytes(tq, tkv, g, d_k, isz):
    width = g * d_k
    io = 2 * isz * (2 * tq * width + 2 * tkv * width)   # q+o, k+v (double-buffered)
    scratch = 4 * tq * (2 * g + width)                  # m, l, acc (f32)
    temps = 3 * 4 * tq * tkv                            # s/p temporaries (f32)
    return io + scratch + temps


def _pick_attention_tiles(s, g, d_k, isz):
    tq_cap, tkv_cap = 512, 1024
    while True:
        tq = _divisor_tile(s, tq_cap, 8)
        tkv = _divisor_tile(s, tkv_cap, 8)
        est = _attn_vmem_bytes(tq, tkv, g, d_k, isz)
        if est <= _VMEM_BUDGET:
            return tq, tkv, est
        if tkv_cap > 128:
            tkv_cap //= 2
        elif tq_cap > 64:
            tq_cap //= 2
        else:
            raise ValueError(
                f"attention tiles for S={s}, width={g * d_k} do not fit the "
                f"VMEM budget; add a padding path")


def _pick_projection_tiles(n, d_in, d_out, isz):
    tm_cap, tk_cap, tn_cap = 256, 1024, 512
    while True:
        tm = _divisor_tile(n, tm_cap, 8)
        tk = _divisor_tile(d_in, tk_cap, 128)
        tn = _divisor_tile(d_out, tn_cap, 128)
        est = (2 * isz * (3 * tm * tk + 3 * tk * tn + 3 * tn + 3 * tm * tn)
               + 4 * 3 * tm * tn)
        if est <= _VMEM_BUDGET:
            return tm, tk, tn, est
        if tk_cap > 256:
            tk_cap //= 2
        elif tn_cap > 128:
            tn_cap //= 2
        elif tm_cap > 64:
            tm_cap //= 2
        else:
            raise ValueError(
                f"projection tiles for N={n}, d_in={d_in}, d_out={d_out} do "
                f"not fit the VMEM budget; add a padding path")


# ----------------------------- kernels ---------------------------------------


def _qkv_proj_kernel(q_ref, k_ref, v_ref, w_ref, b_ref, o_ref, acc_ref, *, scales):
    # q/k/v_ref: (tm, tk); w_ref: (3, tk, tn); b_ref: (3, 1, tn)
    # o_ref: (3, tm, tn); acc_ref: (3, tm, tn) f32.  Grid axis 2 is the K
    # reduction; the output block stays resident across it.
    kk = pl.program_id(2)

    @pl.when(kk == 0)
    def _():
        acc_ref[...] = jnp.zeros_like(acc_ref)

    x_refs = (q_ref, k_ref, v_ref)
    for p in range(3):
        # bf16 MXU operands, f32 accumulation.
        acc_ref[p] += lax.dot_general(
            x_refs[p][...].astype(jnp.bfloat16),
            w_ref[p].astype(jnp.bfloat16),
            dimension_numbers=(((1,), (0,)), ((), ())),
            preferred_element_type=jnp.float32,
        )

    @pl.when(kk == pl.num_programs(2) - 1)
    def _():
        for p in range(3):
            # scales = (1/sqrt(d_k), 1, 1): folds the attention score scale
            # into the Q projection so the attention loop never scales.
            o_ref[p] = ((acc_ref[p] + b_ref[p]) * scales[p]).astype(o_ref.dtype)


def _flash_attention_kernel(q_ref, k_ref, v_ref, o_ref, m_sc, l_sc, acc_sc,
                            *, g, d_k):
    # q_ref: (TQ, G*d_k); k_ref/v_ref: (TKV, G*d_k); o_ref: (TQ, G*d_k)
    # m_sc/l_sc: (G, TQ, 1) f32; acc_sc: (G, TQ, d_k) f32
    ki = pl.program_id(3)

    @pl.when(ki == 0)
    def _():
        m_sc[...] = jnp.full_like(m_sc, -jnp.inf)
        l_sc[...] = jnp.zeros_like(l_sc)
        acc_sc[...] = jnp.zeros_like(acc_sc)

    # Static per-head loop: each iteration ends with scratch stores, bounding
    # its temporaries' live ranges; G is small (<= 8 for d_k >= 64).
    for hh in range(g):
        lo = hh * d_k
        qh = q_ref[:, lo:lo + d_k].astype(jnp.bfloat16)     # (TQ, d_k)
        kh = k_ref[:, lo:lo + d_k].astype(jnp.bfloat16)     # (TKV, d_k)

        # scores (TQ, TKV): contract stored last dims -> no k.T transpose.
        # Scale already folded into the Q projection.
        s = lax.dot_general(
            qh, kh, dimension_numbers=(((1,), (1,)), ((), ())),
            preferred_element_type=jnp.float32,
        )

        m_prev = m_sc[hh]                                   # (TQ, 1)
        m_new = jnp.maximum(m_prev, s.max(axis=-1, keepdims=True))
        alpha = jnp.exp(m_prev - m_new)
        p = jnp.exp(s - m_new)                              # f32 softmax math
        l_sc[hh] = alpha * l_sc[hh] + p.sum(axis=-1, keepdims=True)

        vh = v_ref[:, lo:lo + d_k].astype(jnp.bfloat16)     # (TKV, d_k)
        pv = lax.dot_general(
            p.astype(jnp.bfloat16), vh,
            dimension_numbers=(((1,), (0,)), ((), ())),
            preferred_element_type=jnp.float32,
        )                                                   # (TQ, d_k)
        acc_sc[hh] = alpha * acc_sc[hh] + pv
        m_sc[hh] = m_new

    @pl.when(ki == pl.num_programs(3) - 1)
    def _():
        # Exact reciprocal (once per q-tile) and a single lane-dense store of
        # the full (TQ, G*d_k) tile instead of G masked d_k-wide stores.
        inv_l = pl.reciprocal(l_sc[...], approx=False)      # (G, TQ, 1)
        norm = acc_sc[...] * inv_l                          # (G, TQ, d_k)
        rows = [norm[hh] for hh in range(g)]
        o_ref[...] = jnp.concatenate(rows, axis=-1).astype(o_ref.dtype)


# ----------------------------- wrappers ---------------------------------------


def _project_qkv(q2d, k2d, v2d, w_packed, b_packed, scales):
    """q2d/k2d/v2d: (N, d_in); w_packed: (3, d_in, d_out); b_packed: (3, 1, d_out)."""
    n, d_in = q2d.shape
    d_out = w_packed.shape[-1]
    isz = jnp.dtype(q2d.dtype).itemsize

    tm, tk, tn = _pick_projection_tiles(n, d_in, d_out, isz)[:3]
    est = _pick_projection_tiles(n, d_in, d_out, isz)[3]

    cost = pl.CostEstimate(
        flops=2 * 3 * n * d_in * d_out,
        transcendentals=0,
        bytes_accessed=isz * (3 * n * d_in * (d_out // tn)
                              + 3 * d_in * d_out * (n // tm)
                              + 3 * d_out + 3 * n * d_out),
    )
    grid = (n // tm, d_out // tn, d_in // tk)
    return pl.pallas_call(
        functools.partial(_qkv_proj_kernel, scales=scales),
        out_shape=jax.ShapeDtypeStruct((3, n, d_out), q2d.dtype),
        grid=grid,
        in_specs=[
            pl.BlockSpec((tm, tk), lambda i, j, kk: (i, kk)),
            pl.BlockSpec((tm, tk), lambda i, j, kk: (i, kk)),
            pl.BlockSpec((tm, tk), lambda i, j, kk: (i, kk)),
            pl.BlockSpec((3, tk, tn), lambda i, j, kk: (0, kk, j)),
            pl.BlockSpec((3, 1, tn), lambda i, j, kk: (0, 0, j)),
        ],
        out_specs=pl.BlockSpec((3, tm, tn), lambda i, j, kk: (0, i, j)),
        scratch_shapes=[pltpu.VMEM((3, tm, tn), jnp.float32)],
        compiler_params=pltpu.CompilerParams(
            dimension_semantics=("parallel", "parallel", "arbitrary"),
            vmem_limit_bytes=_vmem_limit(est)),
        cost_estimate=cost,
    )(q2d, k2d, v2d, w_packed, b_packed)


def multi_headed_attention(query, key, value, w_packed, b_packed, h):
    """Equivalent of MultiHeadedAttention.forward with mask=None, dropout=0."""
    B, S, d_in = query.shape
    d_out = w_packed.shape[-1]
    assert d_out % h == 0
    d_k = d_out // h
    N = B * S
    scale = 1.0 / math.sqrt(d_k)
    isz = jnp.dtype(query.dtype).itemsize

    # --- fused, tiled Q/K/V projections (Pallas); scale folded into Q ---
    proj = _project_qkv(
        query.reshape(N, d_in), key.reshape(N, d_in), value.reshape(N, d_in),
        w_packed, b_packed, scales=(scale, 1.0, 1.0))       # (3, N, d_out)
    proj = proj.reshape(3, B, S, d_out)                      # free contiguous view

    # --- flash-style scaled dot-product attention (Pallas) ---
    G = _head_group_size(h, d_k)            # heads per program (lane-dense blocks)
    TQ, TKV, est = _pick_attention_tiles(S, G, d_k, isz)

    cost = pl.CostEstimate(
        flops=4 * B * h * S * S * d_k,              # QK^T + PV
        transcendentals=B * h * S * S,              # exp
        # q read once + o written once + k/v re-read S/TQ times per head group.
        bytes_accessed=isz * B * d_out * S * (2 * (S // TQ) + 2),
    )

    # Note (v7x megacore): all three leading axes are "parallel" so the
    # partitioner can pick whichever of B, h//G, S//TQ divides evenly.
    grid = (B, h // G, S // TQ, S // TKV)
    attn = pl.pallas_call(
        functools.partial(_flash_attention_kernel, g=G, d_k=d_k),
        out_shape=jax.ShapeDtypeStruct((B, S, d_out), query.dtype),
        grid=grid,
        in_specs=[
            # Index directly into packed (3, B, S, d_out): no host relayouts.
            pl.BlockSpec((None, None, TQ, G * d_k),
                         lambda b, g, qi, ki: (0, b, qi, g)),
            pl.BlockSpec((None, None, TKV, G * d_k),
                         lambda b, g, qi, ki: (1, b, ki, g)),
            pl.BlockSpec((None, None, TKV, G * d_k),
                         lambda b, g, qi, ki: (2, b, ki, g)),
        ],
        out_specs=pl.BlockSpec((None, TQ, G * d_k),
                               lambda b, g, qi, ki: (b, qi, g)),
        scratch_shapes=[
            pltpu.VMEM((G, TQ, 1), jnp.float32),      # running max
            pltpu.VMEM((G, TQ, 1), jnp.float32),      # running sum
            pltpu.VMEM((G, TQ, d_k), jnp.float32),    # output accumulator
        ],
        compiler_params=pltpu.CompilerParams(
            dimension_semantics=("parallel", "parallel", "parallel", "arbitrary"),
            vmem_limit_bytes=_vmem_limit(est)),
        cost_estimate=cost,
    )(proj, proj, proj)

    # torch: x.transpose(1,2).contiguous().view(batch, -1) == (B, S, h, d_k)
    # flattened; attn is already laid out as (B, S, h*d_k) -> free reshape.
    return attn.reshape(B, S * d_out)


# ----------------------------- reference --------------------------------------


def _reference(query, key, value, w_packed, b_packed, h):
    B, S, d_in = query.shape
    d_out = w_packed.shape[-1]
    d_k = d_out // h
    projs = []
    for i, x in enumerate((query, key, value)):
        y = x.reshape(B * S, d_in) @ w_packed[i] + b_packed[i]
        projs.append(y.reshape(B, S, h, d_k).transpose(0, 2, 1, 3))
    q, k, v = projs
    scores = jnp.einsum("bhqd,bhkd->bhqk", q, k) / math.sqrt(d_k)
    p = jax.nn.softmax(scores, axis=-1)
    out = jnp.einsum("bhqk,bhkd->bhqd", p, v)
    return out.transpose(0, 2, 1, 3).reshape(B, S * d_out)


# ----------------------------- main --------------------------------------------


if __name__ == "__main__":
    B, S = 2, 8
    h, d_in, d_out = 4, 32, 32

    key0 = jax.random.PRNGKey(0)
    kq, kk, kv, kw, kb = jax.random.split(key0, 5)

    query = jax.random.normal(kq, (B, S, d_in), dtype=jnp.float32)
    key_in = jax.random.normal(kk, (B, S, d_in), dtype=jnp.float32)
    value = jax.random.normal(kv, (B, S, d_in), dtype=jnp.float32)

    # Deterministic nn.Linear-style init: U(-1/sqrt(d_in), 1/sqrt(d_in)).
    bound = 1.0 / math.sqrt(d_in)
    # Weights stored pre-transposed relative to torch: (3, d_in, d_out).
    w_packed = jax.random.uniform(
        kw, (3, d_in, d_out), minval=-bound, maxval=bound, dtype=jnp.float32)
    b_packed = jax.random.uniform(
        kb, (3, 1, d_out), minval=-bound, maxval=bound, dtype=jnp.float32)

    out = multi_headed_attention(query, key_in, value, w_packed, b_packed, h)
    out = jax.block_until_ready(out)

    ref = _reference(query, key_in, value, w_packed, b_packed, h)
    assert out.shape == (B, S * d_out), out.shape
    # bf16 MXU operands (f32 accumulation) -> slightly loosened tolerance.
    assert jnp.allclose(out, ref, atol=2e-2, rtol=2e-2), float(
        jnp.max(jnp.abs(out - ref)))

    print("KERNEL_OK")
</pallas_src>

<mosaic_0001>
module attributes {stable_mosaic.version = 11 : i64} {
  func.func @_qkv_proj_kernel(%arg0: i32, %arg1: i32, %arg2: i32, %arg3: memref<16x32xf32, #tpu.memory_space<vmem>>, %arg4: memref<16x32xf32, #tpu.memory_space<vmem>>, %arg5: memref<16x32xf32, #tpu.memory_space<vmem>>, %arg6: memref<3x32x32xf32, #tpu.memory_space<vmem>>, %arg7: memref<3x1x32xf32, #tpu.memory_space<vmem>>, %arg8: memref<3x16x32xf32, #tpu.memory_space<vmem>>, %arg9: memref<3x16x32xf32, #tpu.memory_space<vmem>>) attributes {dimension_semantics = [#tpu.dimension_semantics<parallel>, #tpu.dimension_semantics<parallel>, #tpu.dimension_semantics<arbitrary>], iteration_bounds = array<i64: 1, 1, 1>, scalar_prefetch = 0 : i64, scratch_operands = 1 : i64, tpu.core_type = #tpu.core_type<tc>, window_params = [{transform_indices = @transform_0, window_bounds = array<i64: 16, 32>}, {transform_indices = @transform_1, window_bounds = array<i64: 16, 32>}, {transform_indices = @transform_2, window_bounds = array<i64: 16, 32>}, {transform_indices = @transform_3, window_bounds = array<i64: 3, 32, 32>}, {transform_indices = @transform_4, window_bounds = array<i64: 3, 1, 32>}, {transform_indices = @transform_5, window_bounds = array<i64: 3, 16, 32>}]} {
    %c0_i32 = arith.constant 0 : i32
    %0 = arith.cmpi eq, %arg2, %c0_i32 : i32
    %1 = arith.extui %0 : i1 to i32
    %c0_i32_0 = arith.constant 0 : i32
    %2 = arith.cmpi ne, %1, %c0_i32_0 : i32
    scf.if %2 {
      %cst_35 = arith.constant 0.000000e+00 : f32
      %42 = vector.broadcast %cst_35 : f32 to vector<3x16x32xf32>
      %c0_36 = arith.constant 0 : index
      %c0_37 = arith.constant 0 : index
      %c0_38 = arith.constant 0 : index
      %43 = vector.load %arg9[%c0_36, %c0_37, %c0_38] : memref<3x16x32xf32, #tpu.memory_space<vmem>>, vector<3x16x32xf32>
      tpu.vector_store %arg9[%c0_36, %c0_37, %c0_38], %42 {strides = array<i32>} : memref<3x16x32xf32, #tpu.memory_space<vmem>>, vector<3x16x32xf32>,
    } else {
    }
    %c0 = arith.constant 0 : index
    %c0_1 = arith.constant 0 : index
    %c0_2 = arith.constant 0 : index
    %3 = vector.load %arg9[%c0, %c0_1, %c0_2] : memref<3x16x32xf32, #tpu.memory_space<vmem>>, vector<1x16x32xf32>
    %4 = vector.shape_cast %3 : vector<1x16x32xf32> to vector<16x32xf32>
    %c0_3 = arith.constant 0 : index
    %c0_4 = arith.constant 0 : index
    %5 = vector.load %arg3[%c0_3, %c0_4] : memref<16x32xf32, #tpu.memory_space<vmem>>, vector<16x32xf32>
    %6 = arith.truncf %5 : vector<16x32xf32> to vector<16x32xbf16>
    %c0_5 = arith.constant 0 : index
    %c0_6 = arith.constant 0 : index
    %c0_7 = arith.constant 0 : index
    %7 = vector.load %arg6[%c0_5, %c0_6, %c0_7] : memref<3x32x32xf32, #tpu.memory_space<vmem>>, vector<1x32x32xf32>
    %8 = vector.shape_cast %7 : vector<1x32x32xf32> to vector<32x32xf32>
    %9 = arith.truncf %8 : vector<32x32xf32> to vector<32x32xbf16>
    %cst = arith.constant dense<0.000000e+00> : vector<16x32xf32>
    %10 = tpu.matmul %6, %9, %cst {dimension_numbers = #tpu.dot_dimension_numbers<[1], [0], [0], [1], [0, 0, 1, 1], [], []>} : vector<16x32xbf16>, vector<32x32xbf16>, vector<16x32xf32> -> vector<16x32xf32>
    %11 = arith.addf %4, %10 : vector<16x32xf32>
    %c0_8 = arith.constant 0 : index
    %c0_9 = arith.constant 0 : index
    %c0_10 = arith.constant 0 : index
    %12 = vector.load %arg9[%c0_8, %c0_9, %c0_10] : memref<3x16x32xf32, #tpu.memory_space<vmem>>, vector<1x16x32xf32>
    %13 = vector.shape_cast %12 : vector<1x16x32xf32> to vector<16x32xf32>
    %14 = vector.shape_cast %11 : vector<16x32xf32> to vector<1x16x32xf32>
    tpu.vector_store %arg9[%c0_8, %c0_9, %c0_10], %14 {strides = array<i32>} : memref<3x16x32xf32, #tpu.memory_space<vmem>>, vector<1x16x32xf32>,
    %c1 = arith.constant 1 : index
    %c0_11 = arith.constant 0 : index
    %c0_12 = arith.constant 0 : index
    %15 = vector.load %arg9[%c1, %c0_11, %c0_12] : memref<3x16x32xf32, #tpu.memory_space<vmem>>, vector<1x16x32xf32>
    %16 = vector.shape_cast %15 : vector<1x16x32xf32> to vector<16x32xf32>
    %c0_13 = arith.constant 0 : index
    %c0_14 = arith.constant 0 : index
    %17 = vector.load %arg4[%c0_13, %c0_14] : memref<16x32xf32, #tpu.memory_space<vmem>>, vector<16x32xf32>
    %18 = arith.truncf %17 : vector<16x32xf32> to vector<16x32xbf16>
    %c1_15 = arith.constant 1 : index
    %c0_16 = arith.constant 0 : index
    %c0_17 = arith.constant 0 : index
    %19 = vector.load %arg6[%c1_15, %c0_16, %c0_17] : memref<3x32x32xf32, #tpu.memory_space<vmem>>, vector<1x32x32xf32>
    %20 = vector.shape_cast %19 : vector<1x32x32xf32> to vector<32x32xf32>
    %21 = arith.truncf %20 : vector<32x32xf32> to vector<32x32xbf16>
    %cst_18 = arith.constant dense<0.000000e+00> : vector<16x32xf32>
    %22 = tpu.matmul %18, %21, %cst_18 {dimension_numbers = #tpu.dot_dimension_numbers<[1], [0], [0], [1], [0, 0, 1, 1], [], []>} : vector<16x32xbf16>, vector<32x32xbf16>, vector<16x32xf32> -> vector<16x32xf32>
    %23 = arith.addf %16, %22 : vector<16x32xf32>
    %c1_19 = arith.constant 1 : index
    %c0_20 = arith.constant 0 : index
    %c0_21 = arith.constant 0 : index
    %24 = vector.load %arg9[%c1_19, %c0_20, %c0_21] : memref<3x16x32xf32, #tpu.memory_space<vmem>>, vector<1x16x32xf32>
    %25 = vector.shape_cast %24 : vector<1x16x32xf32> to vector<16x32xf32>
    %26 = vector.shape_cast %23 : vector<16x32xf32> to vector<1x16x32xf32>
    tpu.vector_store %arg9[%c1_19, %c0_20, %c0_21], %26 {strides = array<i32>} : memref<3x16x32xf32, #tpu.memory_space<vmem>>, vector<1x16x32xf32>,
    %c2 = arith.constant 2 : index
    %c0_22 = arith.constant 0 : index
    %c0_23 = arith.constant 0 : index
    %27 = vector.load %arg9[%c2, %c0_22, %c0_23] : memref<3x16x32xf32, #tpu.memory_space<vmem>>, vector<1x16x32xf32>
    %28 = vector.shape_cast %27 : vector<1x16x32xf32> to vector<16x32xf32>
    %c0_24 = arith.constant 0 : index
    %c0_25 = arith.constant 0 : index
    %29 = vector.load %arg5[%c0_24, %c0_25] : memref<16x32xf32, #tpu.memory_space<vmem>>, vector<16x32xf32>
    %30 = arith.truncf %29 : vector<16x32xf32> to vector<16x32xbf16>
    %c2_26 = arith.constant 2 : index
    %c0_27 = arith.constant 0 : index
    %c0_28 = arith.constant 0 : index
    %31 = vector.load %arg6[%c2_26, %c0_27, %c0_28] : memref<3x32x32xf32, #tpu.memory_space<vmem>>, vector<1x32x32xf32>
    %32 = vector.shape_cast %31 : vector<1x32x32xf32> to vector<32x32xf32>
    %33 = arith.truncf %32 : vector<32x32xf32> to vector<32x32xbf16>
    %cst_29 = arith.constant dense<0.000000e+00> : vector<16x32xf32>
    %34 = tpu.matmul %30, %33, %cst_29 {dimension_numbers = #tpu.dot_dimension_numbers<[1], [0], [0], [1], [0, 0, 1, 1], [], []>} : vector<16x32xbf16>, vector<32x32xbf16>, vector<16x32xf32> -> vector<16x32xf32>
    %35 = arith.addf %28, %34 : vector<16x32xf32>
    %c2_30 = arith.constant 2 : index
    %c0_31 = arith.constant 0 : index
    %c0_32 = arith.constant 0 : index
    %36 = vector.load %arg9[%c2_30, %c0_31, %c0_32] : memref<3x16x32xf32, #tpu.memory_space<vmem>>, vector<1x16x32xf32>
    %37 = vector.shape_cast %36 : vector<1x16x32xf32> to vector<16x32xf32>
    %38 = vector.shape_cast %35 : vector<16x32xf32> to vector<1x16x32xf32>
    tpu.vector_store %arg9[%c2_30, %c0_31, %c0_32], %38 {strides = array<i32>} : memref<3x16x32xf32, #tpu.memory_space<vmem>>, vector<1x16x32xf32>,
    %c0_i32_33 = arith.constant 0 : i32
    %39 = arith.cmpi eq, %arg2, %c0_i32_33 : i32
    %40 = arith.extui %39 : i1 to i32
    %c0_i32_34 = arith.constant 0 : i32
    %41 = arith.cmpi ne, %40, %c0_i32_34 : i32
    scf.if %41 {
      %c0_35 = arith.constant 0 : index
      %c0_36 = arith.constant 0 : index
      %c0_37 = arith.constant 0 : index
      %42 = vector.load %arg9[%c0_35, %c0_36, %c0_37] : memref<3x16x32xf32, #tpu.memory_space<vmem>>, vector<1x16x32xf32>
      %43 = vector.shape_cast %42 : vector<1x16x32xf32> to vector<16x32xf32>
      %c0_38 = arith.constant 0 : index
      %c0_39 = arith.constant 0 : index
      %c0_40 = arith.constant 0 : index
      %44 = vector.load %arg7[%c0_38, %c0_39, %c0_40] : memref<3x1x32xf32, #tpu.memory_space<vmem>>, vector<1x1x32xf32>
      %45 = vector.shape_cast %44 : vector<1x1x32xf32> to vector<1x32xf32>
      %46 = vector.broadcast %45 : vector<1x32xf32> to vector<16x32xf32>
      %47 = arith.addf %43, %46 : vector<16x32xf32>
      %cst_41 = arith.constant 0.353553385 : f32
      %48 = vector.broadcast %cst_41 : f32 to vector<16x32xf32>
      %49 = arith.mulf %47, %48 : vector<16x32xf32>
      %c0_42 = arith.constant 0 : index
      %c0_43 = arith.constant 0 : index
      %c0_44 = arith.constant 0 : index
      %50 = vector.load %arg8[%c0_42, %c0_43, %c0_44] : memref<3x16x32xf32, #tpu.memory_space<vmem>>, vector<1x16x32xf32>
      %51 = vector.shape_cast %50 : vector<1x16x32xf32> to vector<16x32xf32>
      %52 = vector.shape_cast %49 : vector<16x32xf32> to vector<1x16x32xf32>
      tpu.vector_store %arg8[%c0_42, %c0_43, %c0_44], %52 {strides = array<i32>} : memref<3x16x32xf32, #tpu.memory_space<vmem>>, vector<1x16x32xf32>,
      %c1_45 = arith.constant 1 : index
      %c0_46 = arith.constant 0 : index
      %c0_47 = arith.constant 0 : index
      %53 = vector.load %arg9[%c1_45, %c0_46, %c0_47] : memref<3x16x32xf32, #tpu.memory_space<vmem>>, vector<1x16x32xf32>
      %54 = vector.shape_cast %53 : vector<1x16x32xf32> to vector<16x32xf32>
      %c1_48 = arith.constant 1 : index
      %c0_49 = arith.constant 0 : index
      %c0_50 = arith.constant 0 : index
      %55 = vector.load %arg7[%c1_48, %c0_49, %c0_50] : memref<3x1x32xf32, #tpu.memory_space<vmem>>, vector<1x1x32xf32>
      %56 = vector.shape_cast %55 : vector<1x1x32xf32> to vector<1x32xf32>
      %57 = vector.broadcast %56 : vector<1x32xf32> to vector<16x32xf32>
      %58 = arith.addf %54, %57 : vector<16x32xf32>
      %cst_51 = arith.constant 1.000000e+00 : f32
      %59 = vector.broadcast %cst_51 : f32 to vector<16x32xf32>
      %60 = arith.mulf %58, %59 : vector<16x32xf32>
      %c1_52 = arith.constant 1 : index
      %c0_53 = arith.constant 0 : index
      %c0_54 = arith.constant 0 : index
      %61 = vector.load %arg8[%c1_52, %c0_53, %c0_54] : memref<3x16x32xf32, #tpu.memory_space<vmem>>, vector<1x16x32xf32>
      %62 = vector.shape_cast %61 : vector<1x16x32xf32> to vector<16x32xf32>
      %63 = vector.shape_cast %60 : vector<16x32xf32> to vector<1x16x32xf32>
      tpu.vector_store %arg8[%c1_52, %c0_53, %c0_54], %63 {strides = array<i32>} : memref<3x16x32xf32, #tpu.memory_space<vmem>>, vector<1x16x32xf32>,
      %c2_55 = arith.constant 2 : index
      %c0_56 = arith.constant 0 : index
      %c0_57 = arith.constant 0 : index
      %64 = vector.load %arg9[%c2_55, %c0_56, %c0_57] : memref<3x16x32xf32, #tpu.memory_space<vmem>>, vector<1x16x32xf32>
      %65 = vector.shape_cast %64 : vector<1x16x32xf32> to vector<16x32xf32>
      %c2_58 = arith.constant 2 : index
      %c0_59 = arith.constant 0 : index
      %c0_60 = arith.constant 0 : index
      %66 = vector.load %arg7[%c2_58, %c0_59, %c0_60] : memref<3x1x32xf32, #tpu.memory_space<vmem>>, vector<1x1x32xf32>
      %67 = vector.shape_cast %66 : vector<1x1x32xf32> to vector<1x32xf32>
      %68 = vector.broadcast %67 : vector<1x32xf32> to vector<16x32xf32>
      %69 = arith.addf %65, %68 : vector<16x32xf32>
      %cst_61 = arith.constant 1.000000e+00 : f32
      %70 = vector.broadcast %cst_61 : f32 to vector<16x32xf32>
      %71 = arith.mulf %69, %70 : vector<16x32xf32>
      %c2_62 = arith.constant 2 : index
      %c0_63 = arith.constant 0 : index
      %c0_64 = arith.constant 0 : index
      %72 = vector.load %arg8[%c2_62, %c0_63, %c0_64] : memref<3x16x32xf32, #tpu.memory_space<vmem>>, vector<1x16x32xf32>
      %73 = vector.shape_cast %72 : vector<1x16x32xf32> to vector<16x32xf32>
      %74 = vector.shape_cast %71 : vector<16x32xf32> to vector<1x16x32xf32>
      tpu.vector_store %arg8[%c2_62, %c0_63, %c0_64], %74 {strides = array<i32>} : memref<3x16x32xf32, #tpu.memory_space<vmem>>, vector<1x16x32xf32>,
    } else {
    }
    return
  }
  func.func @transform_0(%arg0: i32, %arg1: i32, %arg2: i32) -> (i32, i32) {
    %c0_i32 = arith.constant 0 : i32
    return %arg0, %arg2 : i32, i32
  }
  func.func @transform_1(%arg0: i32, %arg1: i32, %arg2: i32) -> (i32, i32) {
    %c0_i32 = arith.constant 0 : i32
    return %arg0, %arg2 : i32, i32
  }
  func.func @transform_2(%arg0: i32, %arg1: i32, %arg2: i32) -> (i32, i32) {
    %c0_i32 = arith.constant 0 : i32
    return %arg0, %arg2 : i32, i32
  }
  func.func @transform_3(%arg0: i32, %arg1: i32, %arg2: i32) -> (i32, i32, i32) {
    %c0_i32 = arith.constant 0 : i32
    %c0_i32_0 = arith.constant 0 : i32
    return %c0_i32, %arg2, %arg1 : i32, i32, i32
  }
  func.func @transform_4(%arg0: i32, %arg1: i32, %arg2: i32) -> (i32, i32, i32) {
    %c0_i32 = arith.constant 0 : i32
    %c0_i32_0 = arith.constant 0 : i32
    %c0_i32_1 = arith.constant 0 : i32
    return %c0_i32, %c0_i32_0, %arg1 : i32, i32, i32
  }
  func.func @transform_5(%arg0: i32, %arg1: i32, %arg2: i32) -> (i32, i32, i32) {
    %c0_i32 = arith.constant 0 : i32
    %c0_i32_0 = arith.constant 0 : i32
    return %c0_i32, %arg0, %arg1 : i32, i32, i32
  }
}

</mosaic_0001>

<bundles_post_ra>
// kernel: tpu_custom_call.1
= control target key start
LH: loop header
LB: loop body
LE: loop exit
PB: predicated region body
PF: predicated region fallthrough
CT: control target
= control target key end

     0   :  { %10 = vsyncpa [#allocation4], 0  ;;  %s666_s0 = inlined_call_operand.hbm [shape: f32[16,32], index: 0, kind: input, shape index: {}]   ;;  %s667_s1 = inlined_call_operand.hbm [shape: f32[16,32], index: 1, kind: input, shape index: {}]   ;;  %s668_s2 = inlined_call_operand.hbm [shape: f32[16,32], index: 2, kind: input, shape index: {}]   ;;  %s669_s3 = inlined_call_operand.hbm [shape: f32[3,32,32], index: 3, kind: input, shape index: {}]   ;;  %s670_s4 = inlined_call_operand.vmem [shape: f32[3,1,32], index: 4, kind: input, shape index: {}]   ;;  %s671_s5 = inlined_call_operand.hbm [shape: f32[3,16,32], index: 5, kind: output, shape index: {}]  }
   0x1   :  { %11 = vsyncpa [#allocation7], 0 }
   0x2   :  { %12 = vsyncpa [#allocation10], 0 }
   0x3   :  { %13 = vsyncpa [#allocation5], 0  ;;  %s505_s18 = smov [#allocation6]   ;;  %s506_s20 = smov [#allocation3]  }
   0x4   :  { %s31_s19 = sshll.u32 %s505_s18, 4  ;;  %s19_s21 = sshll.u32 %s506_s20, 4  ;;  %s32_s19 = int_to_ptr.vmem [resolvable:$true] %s31_s19  ;;  %s544_s21 = int_to_ptr.vmem [resolvable:$true] %s19_s21 }
   0x5   :  { %s387_s24 = scalar_lea.hbm %s667_s1, 256 }
   0x6   :  { %p388_p0 = scmp.ne.s32.totalorder %s667_s1, %s387_s24  ;;  %p391_p1 = scmp.lt.u32.totalorder %s387_s24, %s667_s1 }
   0x8   :  { %p393_p2 = pnand %p391_p1, %p388_p0 }
   0xa   :  { %396 = shalt.err (!%p393_p2)
}
   0xb   :  { %s397_s29 = scalar_lea.vmem %s32_s19, 256  ;;  %p402_p4 = scmp.lt.s32.totalorder %s32_s19, %s32_s19 }
   0xc   :  { %p398_p3 = scmp.ne.s32.totalorder %s32_s19, %s397_s29  ;;  %p403_p5 = scmp.lt.s32.totalorder %s397_s29, %s397_s29 }
   0xe   :  { %p404_p6 = por %p403_p5, %p402_p4 }
  0x10   :  { %p405_p7 = pnand %p404_p6, %p398_p3 }
  0x12   :  { %408 = shalt.err (!%p405_p7)
}
  0x13   :  { %s507_s30 = smov 128   ;;  %s508_s6 = smov 8  }
  0x14   :  { %37 = dma.hbm_to_vmem [thread:$0]  %s667_s1, 256, %s32_s19, [#allocation7], %s507_s30, %s507_s30, %s508_s6  }
  0x15   :  { %s409_s11 = scalar_lea.hbm %s666_s0, 256 }
  0x16   :  { %p410_p8 = scmp.ne.s32.totalorder %s666_s0, %s409_s11  ;;  %p413_p9 = scmp.lt.u32.totalorder %s409_s11, %s666_s0 }
  0x18   :  { %p415_p10 = pnand %p413_p9, %p410_p8 }
  0x1a   :  { %418 = shalt.err (!%p415_p10)
}
  0x1b   :  { %s419_s16 = scalar_lea.vmem %s544_s21, 256  ;;  %p424_p12 = scmp.lt.s32.totalorder %s544_s21, %s544_s21 }
  0x1c   :  { %p420_p11 = scmp.ne.s32.totalorder %s544_s21, %s419_s16  ;;  %p425_p13 = scmp.lt.s32.totalorder %s419_s16, %s419_s16 }
  0x1e   :  { %p426_p0 = por %p425_p13, %p424_p12 }
  0x20   :  { %p427_p1 = pnand %p426_p0, %p420_p11 }
  0x22   :  { %430 = shalt.err (!%p427_p1)
}
  0x23   :  { %25 = dma.hbm_to_vmem [thread:$0]  %s666_s0, 256, %s544_s21, [#allocation4], %s507_s30, %s507_s30, %s508_s6  }
  0x24   :  { %s509_s18 = smov [#allocation8]   ;;  %s510_s20 = smov [#allocation9]  }
  0x25   :  { %s43_s19 = sshll.u32 %s509_s18, 4  ;;  %s55_s22 = sshll.u32 %s510_s20, 4  ;;  %s44_s19 = int_to_ptr.vmem [resolvable:$true] %s43_s19  ;;  %s581_s22 = int_to_ptr.vmem [resolvable:$true] %s55_s22 }
  0x26   :  { %s431_s25 = scalar_lea.hbm %s668_s2, 256 }
  0x27   :  { %p432_p2 = scmp.ne.s32.totalorder %s668_s2, %s431_s25  ;;  %p435_p3 = scmp.lt.u32.totalorder %s431_s25, %s668_s2 }
  0x29   :  { %p437_p4 = pnand %p435_p3, %p432_p2 }
  0x2b   :  { %440 = shalt.err (!%p437_p4)
}
  0x2c   :  { %s441_s0 = scalar_lea.vmem %s44_s19, 256  ;;  %p446_p6 = scmp.lt.s32.totalorder %s44_s19, %s44_s19 }
  0x2d   :  { %p442_p5 = scmp.ne.s32.totalorder %s44_s19, %s441_s0  ;;  %p447_p7 = scmp.lt.s32.totalorder %s441_s0, %s441_s0 }
  0x2f   :  { %p448_p8 = por %p447_p7, %p446_p6 }
  0x31   :  { %p449_p9 = pnand %p448_p8, %p442_p5 }
  0x33   :  { %452 = shalt.err (!%p449_p9)
}
  0x34   :  { %49 = dma.hbm_to_vmem [thread:$0]  %s668_s2, 256, %s44_s19, [#allocation7], %s507_s30, %s507_s30, %s508_s6  }
  0x35   :  { %s453_s10 = scalar_lea.hbm %s669_s3, 1536 }
  0x36   :  { %p454_p10 = scmp.ne.s32.totalorder %s669_s3, %s453_s10  ;;  %p457_p11 = scmp.lt.u32.totalorder %s453_s10, %s669_s3 }
  0x38   :  { %p459_p12 = pnand %p457_p11, %p454_p10 }
  0x3a   :  { %462 = shalt.err (!%p459_p12)
}
  0x3b   :  { %s463_s15 = scalar_lea.vmem %s581_s22, 1536  ;;  %p468_p0 = scmp.lt.s32.totalorder %s581_s22, %s581_s22 }
  0x3c   :  { %p464_p13 = scmp.ne.s32.totalorder %s581_s22, %s463_s15  ;;  %p469_p1 = scmp.lt.s32.totalorder %s463_s15, %s463_s15 }
  0x3e   :  { %p470_p2 = por %p469_p1, %p468_p0 }
  0x40   :  { %p471_p3 = pnand %p470_p2, %p464_p13 }
  0x42   :  { %474 = shalt.err (!%p471_p3)
}
  0x43   :  { %61 = dma.hbm_to_vmem [thread:$0]  %s669_s3, 1536, %s581_s22, [#allocation10], %s507_s30, %s507_s30, %s508_s6  }
  0x44   :  { %497 = dma.done.wait [#allocation4], 256  }
  0x45   :  { %498 = vsyncadd [#allocation4], 4294967040 }
  0x46   :  { %499 = dma.done.wait [#allocation7], 512  }
  0x47   :  { %500 = vsyncadd [#allocation7], 4294966784 }
  0x48   :  { %501 = dma.done.wait [#allocation10], 1536  }
  0x49   :  { %502 = vsyncadd [#allocation10], 4294965760  ;;  %vm81_vm0 = vcmask 261120   ;;  %v511_v0 = vmov 0.0   ;;  %vm512_vm1 = vmmov 0   ;;  %v93_v1 = vld [vmem:[#allocation9] sm:$0xff] }
  0x4a   :  { %354 = vmatprep.subr.bf16.mxu0 %v511_v0  ;;  %362 = vmatprep.subr.bf16.mxu1 %v511_v0  ;;  %82 = vst.msk [vmem:[#allocation2] sm:$0xff] %vm81_vm0, %v511_v0  ;;  %83 = vst.msk [vmem:[#allocation2 + $0x8] sm:$0xff] %vm81_vm0, %v511_v0  ;;  %v94_v2 = vld [vmem:[#allocation9 + $0x8] sm:$0xff]  ;;  %v95_v3 = vld [vmem:[#allocation9 + $0x10] sm:$0xff]  ;;  %s513_s22 = smov [#allocation11]  }
  0x4b   :  { %84 = vst.msk [vmem:[#allocation2 + $0x10] sm:$0xff] %vm81_vm0, %v511_v0  ;;  %85 = vst.msk [vmem:[#allocation2 + $0x18] sm:$0xff] %vm81_vm0, %v511_v0  ;;  %358 = vmatprep.mubr.msk.bf16.mxu0 %vm512_vm1, %v511_v0  ;;  %366 = vmatprep.mubr.msk.bf16.mxu1 %vm512_vm1, %v511_v0  ;;  %v97_v4 = vpack.c.bf16 %v94_v2, %v93_v1  ;;  %v96_v5 = vld [vmem:[#allocation9 + $0x18] sm:$0xff]  ;;  %v155_v6 = vld [vmem:[#allocation9 + $0x20] sm:$0xff]  ;;  %s323_s23 = sshll.u32 %s513_s22, 4  ;;  %s324_s23 = int_to_ptr.vmem [resolvable:$true] %s323_s23 }
  0x4c   :  { %86 = vst.msk [vmem:[#allocation2 + $0x20] sm:$0xff] %vm81_vm0, %v511_v0  ;;  %87 = vst.msk [vmem:[#allocation2 + $0x28] sm:$0xff] %vm81_vm0, %v511_v0  ;;  %v156_v7 = vld [vmem:[#allocation9 + $0x28] sm:$0xff]  ;;  %v90_v9 = vld [vmem:[#allocation3] sm:$0xff]  ;;  %v98_v10 = vpack.c.bf16 %v96_v5, %v95_v3  ;;  %s475_s24 = scalar_lea.vmem %s324_s23, 768  ;;  %p480_p5 = scmp.lt.s32.totalorder %s324_s23, %s324_s23 }
  0x4d   :  { %v159_v8 = vpack.c.bf16 %v156_v7, %v155_v6  ;;  %355 = vmatpush3.bf16.msra.mxu0 %v97_v4  ;;  %v91_v11 = vld [vmem:[#allocation3 + $0x8] sm:$0xff]  ;;  %v157_v12 = vld [vmem:[#allocation9 + $0x30] sm:$0xff]  ;;  %v216_v14 = vld [vmem:[#allocation9 + $0x40] sm:$0xff]  ;;  %p476_p4 = scmp.ne.s32.totalorder %s324_s23, %s475_s24  ;;  %p481_p6 = scmp.lt.s32.totalorder %s475_s24, %s475_s24 }
  0x4e   :  { %v158_v13 = vld [vmem:[#allocation9 + $0x38] sm:$0xff]  ;;  %356 = vmatprep.subr.bf16.mxu0 %v511_v0  ;;  %v217_v15 = vld [vmem:[#allocation9 + $0x48] sm:$0xff]  ;;  %v151_v17 = vld [vmem:[#allocation6] sm:$0xff]  ;;  %v92_v19 = vpack.c.bf16 %v91_v11, %v90_v9 }
  0x4f   :  { %363 = vmatpush3.bf16.msra.mxu1 %v159_v8  ;;  %v160_v16 = vpack.c.bf16 %v158_v13, %v157_v12  ;;  %v152_v18 = vld [vmem:[#allocation6 + $0x8] sm:$0xff]  ;;  %v220_v20 = vpack.c.bf16 %v217_v15, %v216_v14  ;;  %v218_v22 = vld [vmem:[#allocation9 + $0x50] sm:$0xff]  ;;  %v219_v23 = vld [vmem:[#allocation9 + $0x58] sm:$0xff]  ;;  %p482_p7 = por %p481_p6, %p480_p5 }
  0x50   :  { %364 = vmatprep.subr.bf16.mxu1 %v511_v0  ;;  %v153_v21 = vpack.c.bf16 %v152_v18, %v151_v17  ;;  %v221_v24 = vpack.c.bf16 %v219_v23, %v218_v22  ;;  %v212_v25 = vld [vmem:[#allocation8] sm:$0xff]  ;;  %v213_v26 = vld [vmem:[#allocation8 + $0x8] sm:$0xff]  ;;  %v340_v47 = vld [vmem:[%s670_s4] ss:$0 sm:$0xff] }
  0x51   :  { %357 = vmatpush3.bf16.msra.mxu0 %v98_v10  ;;  %v214_v27 = vpack.c.bf16 %v213_v26, %v212_v25  ;;  %v88_v28 = vld [vmem:[#allocation2] sm:$0xff]  ;;  %v89_v31 = vld [vmem:[#allocation2 + $0x8] sm:$0xff]  ;;  %p483_p8 = pnand %p482_p7, %p476_p4 }
  0x52   :  { %370 = vmatprep.subr.bf16.mxu0 %v511_v0  ;;  %v149_v29 = vld [vmem:[#allocation2 + $0x10] sm:$0xff]  ;;  %v150_v35 = vld [vmem:[#allocation2 + $0x18] sm:$0xff]  ;;  %v342_v50 = vld [vmem:[%s670_s4 + $0x1] ss:$0 sm:$0xff] }
  0x53   :  { %365 = vmatpush3.bf16.msra.mxu1 %v160_v16  ;;  %v210_v44 = vld [vmem:[#allocation2 + $0x20] sm:$0xff]  ;;  %v211_v46 = vld [vmem:[#allocation2 + $0x28] sm:$0xff] }
  0x54   :  { %359 = vmatmul.mubr.msk.bf16.vlgmr.msra.gmra.mrb[0].mxu0 %vm81_vm0, %v92_v19 }
  0x55   :  { %371 = vmatpush3.bf16.msra.mxu0 %v220_v20  ;;  %374 = vmatprep.mubr.msk.bf16.mxu0 %vm512_vm1, %v511_v0 }
  0x56   :  { %367 = vmatmul.mubr.msk.bf16.vlgmr.msra.gmra.mrb[0].mxu1 %vm81_vm0, %v153_v21  ;;  %372 = vmatprep.subr.bf16.mxu0 %v511_v0  ;;  %v344_v0 = vld [vmem:[%s670_s4 + $0x2] ss:$0 sm:$0xff] }
  0x59   :  { %373 = vmatpush3.bf16.msra.mxu0 %v221_v24 }
  0x5c   :  { %375 = vmatmul.mubr.msk.bf16.vlgmr.msra.gmra.mrb[4].mxu0 %vm81_vm0, %v214_v27 }
 0x127   :  { %v137_v30 = vpop.f32.mrb[0].mxu0 }
 0x128   :  { %v144_v32 = vadd.f32 %v137_v30, %v88_v28  ;;  %v360_v33 = vpop.f32.mrb[1].mxu0 }
 0x129   :  { %v198_v34 = vpop.f32.mrb[0].mxu1  ;;  %v140_v36 = vpop.f32.mrb[2].mxu0 }
 0x12a   :  { %v205_v37 = vadd.f32 %v198_v34, %v149_v29  ;;  %v368_v38 = vpop.f32.mrb[1].mxu1  ;;  %146 = vst.msk [vmem:[#allocation2] sm:$0xff] %vm81_vm0, %v144_v32  ;;  %v145_v39 = vadd.f32 %v140_v36, %v89_v31  ;;  %v361_v40 = vpop.f32.mrb[3].mxu0 }
 0x12b   :  { %v201_v41 = vpop.f32.mrb[2].mxu1 }
 0x12c   :  { %207 = vst.msk [vmem:[#allocation2 + $0x10] sm:$0xff] %vm81_vm0, %v205_v37  ;;  %v206_v42 = vadd.f32 %v201_v41, %v150_v35  ;;  %v369_v43 = vpop.f32.mrb[3].mxu1  ;;  %147 = vst.msk [vmem:[#allocation2 + $0x8] sm:$0xff] %vm81_vm0, %v145_v39 }
 0x12e   :  { %208 = vst.msk [vmem:[#allocation2 + $0x18] sm:$0xff] %vm81_vm0, %v206_v42 }
 0x12f   :  { %v259_v45 = vpop.f32.mrb[4].mxu0 }
 0x130   :  { %v266_v48 = vadd.f32 %v259_v45, %v210_v44  ;;  %v376_v49 = vpop.f32.mrb[5].mxu0 }
 0x131   :  { %v262_v51 = vpop.f32.mrb[6].mxu0  ;;  %v273_v52 = vld [vmem:[#allocation2] sm:$0xff] }
 0x132   :  { %268 = vst.msk [vmem:[#allocation2 + $0x20] sm:$0xff] %vm81_vm0, %v266_v48  ;;  %v267_v53 = vadd.f32 %v262_v51, %v211_v46  ;;  %v377_v54 = vpop.f32.mrb[7].mxu0  ;;  %v282_v55 = vadd.f32 %v340_v47, %v273_v52 }
 0x133   :  { %v288_v56 = vld [vmem:[#allocation2 + $0x10] sm:$0xff]  ;;  %v274_v57 = vld [vmem:[#allocation2 + $0x8] sm:$0xff] }
 0x134   :  { %v298_v58 = vadd.f32 %v342_v50, %v288_v56  ;;  %269 = vst.msk [vmem:[#allocation2 + $0x28] sm:$0xff] %vm81_vm0, %v267_v53  ;;  %v283_v59 = vadd.f32 %v340_v47, %v274_v57  ;;  %v284_v60 = vmul.f32 0.35355338, %v282_v55 }
 0x135   :  { %v289_v61 = vld [vmem:[#allocation2 + $0x18] sm:$0xff] }
 0x136   :  { %v299_v62 = vadd.f32 %v342_v50, %v289_v61  ;;  %301 = vst.msk [vmem:[#allocation11 + $0x10] sm:$0xff] %vm81_vm0, %v298_v58  ;;  %v285_v63 = vmul.f32 0.35355338, %v283_v59  ;;  %286 = vst.msk [vmem:[#allocation11] sm:$0xff] %vm81_vm0, %v284_v60 }
 0x138   :  { %302 = vst.msk [vmem:[#allocation11 + $0x18] sm:$0xff] %vm81_vm0, %v299_v62  ;;  %287 = vst.msk [vmem:[#allocation11 + $0x8] sm:$0xff] %vm81_vm0, %v285_v63 }
 0x139   :  { %v303_v1 = vld [vmem:[#allocation2 + $0x20] sm:$0xff] }
 0x13a   :  { %v313_v2 = vadd.f32 %v344_v0, %v303_v1 }
 0x13b   :  { %v304_v3 = vld [vmem:[#allocation2 + $0x28] sm:$0xff] }
 0x13c   :  { %v314_v4 = vadd.f32 %v344_v0, %v304_v3  ;;  %316 = vst.msk [vmem:[#allocation11 + $0x20] sm:$0xff] %vm81_vm0, %v313_v2 }
 0x13e   :  { %317 = vst.msk [vmem:[#allocation11 + $0x28] sm:$0xff] %vm81_vm0, %v314_v4 }
 0x13f   :  { %486 = shalt.err (!%p483_p8)
}
 0x140   :  { %s487_s26 = scalar_lea.hbm %s671_s5, 768 }
 0x141   :  { %p488_p9 = scmp.ne.s32.totalorder %s671_s5, %s487_s26  ;;  %p491_p10 = scmp.lt.u32.totalorder %s487_s26, %s671_s5 }
 0x143   :  { %p493_p11 = pnand %p491_p10, %p488_p9 }
 0x145   :  { %496 = shalt.err (!%p493_p11)
}
 0x146   :  { %329 = dma.vmem_to_hbm [thread:$0]  %s324_s23, 768, %s671_s5, [#allocation5], %s507_s30, %s507_s30, %s508_s6  }
 0x147   :  { %503 = dma.done.wait [#allocation5], 768  }
 0x148   :  { %504 = vsyncadd [#allocation5], 4294966528 }
 0x149   :  { %333 = vsyncpa [#allocation4], 1 }
 0x14a   :  { %334 = vsyncpa [#allocation7], 1 }
 0x14b   :  { %335 = vsyncpa [#allocation10], 1 }
 0x14c   :  { %336 = vsyncpa [#allocation5], 1 }

</bundles_post_ra>
